<compile_context>
chip_gen: v7x
topology: tpu7x:2x2x1
jax: 0.10.0
libtpu: 0.0.40
codegen_flags: <defaults>
</compile_context>

<pallas_src>
import functools
import math

import jax
import jax.numpy as jnp
from jax.experimental import pallas as pl
from jax.experimental.pallas import tpu as pltpu


# ----------------------------------------------------------------------------- kernels ---

def pe_add_slab_kernel(x_ref, pe_ref, o_ref, *, batch, d):
    # x_ref: (tS, B*D)  pe_ref: (tS, D) fp32  o_ref: (tS, B*D).  D % 128 == 0 guaranteed.
    pe = pe_ref[...]                                   # fp32
    for b in range(batch):                             # static unroll; lane-aligned slabs
        sl = slice(b * d, (b + 1) * d)
        o_ref[:, sl] = (x_ref[:, sl].astype(jnp.float32) + pe).astype(o_ref.dtype)


def pe_add_full_kernel(x_ref, pe_ref, o_ref):
    # x_ref: (tS, B*D)  pe_ref: (tS, B*D) fp32 (pre-broadcast)  o_ref: (tS, B*D)
    o_ref[...] = (x_ref[...].astype(jnp.float32) + pe_ref[...]).astype(o_ref.dtype)


# ------------------------------------------------------------------------------ helpers ---

def make_pe(max_len: int, d_model: int):
    """(max_len, d_model) fp32 positional-encoding table; same math as the PyTorch __init__."""
    position = jnp.arange(max_len, dtype=jnp.float32)[:, None]
    div_term = jnp.exp(
        jnp.arange(0, d_model, 2, dtype=jnp.float32) * (-math.log(10000.0) / d_model)
    )
    ang = position * div_term
    pe = jnp.zeros((max_len, d_model), dtype=jnp.float32)
    pe = pe.at[:, 0::2].set(jnp.sin(ang))
    pe = pe.at[:, 1::2].set(jnp.cos(ang))
    return pe


def _vmem_capacity_bytes():
    try:
        info = pltpu.get_tpu_info()
        cap = getattr(info, "vmem_capacity_bytes", None)
        if cap:
            return int(cap)
    except Exception:
        pass
    return 64 * 1024 * 1024  # conservative (v7x per-TC physical)


# ------------------------------------------------------------------------------ wrapper ---

def positional_encoding(x, pe2d):
    """x: (S, B, D); pe2d: (max_len, D) fp32 table. Returns x + pe2d[:S][:, None, :] (p=0)."""
    S, B, D = x.shape
    max_len, d_model = pe2d.shape
    assert d_model == D and max_len >= S
    BD = B * D
    pe_f32 = pe2d.astype(jnp.float32)

    # Lane-density guard: tiny last dim -> masked partial stores + call overhead; use XLA.
    if BD < 128:
        return (x.astype(jnp.float32) + pe_f32[:S][:, None, :]).astype(x.dtype)

    x2 = x.reshape(S, BD)                      # contiguous reshape, no data movement

    # pe replication strategy (see header): slab-add when D is lane-aligned, else
    # pre-broadcast the (small) table once so the kernel stays a dense full-width add.
    if D % 128 == 0:
        pe_arr = pe_f32                                        # (max_len, D)
        pe_width = D
        kernel = functools.partial(pe_add_slab_kernel, batch=B, d=D)
    else:
        pe_arr = jnp.tile(pe_f32, (1, B))                      # (max_len, B*D), tiny
        pe_width = BD
        kernel = pe_add_full_kernel

    # Chip-aware VMEM budget for live (double-buffered) x / out / pe tiles.
    vmem_cap = _vmem_capacity_bytes()
    budget = min(vmem_cap // 3, 48 * 1024 * 1024)
    vmem_limit = int(min(vmem_cap, budget + (8 << 20)))

    x_itemsize = jnp.dtype(x.dtype).itemsize
    sub = {4: 8, 2: 16, 1: 32}.get(x_itemsize, 8)              # dtype-aware sublane packing
    bytes_per_row = 2 * (2 * BD * x_itemsize + pe_width * 4)   # x + out (+pe fp32), 2-deep

    if S <= sub:
        tS = S                                                  # single full-extent block
    else:
        tS = min(max(budget // bytes_per_row, sub), S)
        if S > 4 * sub:
            # Keep >= 4 grid blocks so v7x megacore gets >= 2 steps per TensorCore.
            tS = min(tS, sub * pl.cdiv(pl.cdiv(S, 4), sub))
        tS = max(sub, (tS // sub) * sub)                        # floor to packing granule
        if tS >= S:
            tS = S

    grid = (pl.cdiv(S, tS),)

    out2 = pl.pallas_call(
        kernel,
        out_shape=jax.ShapeDtypeStruct((S, BD), x.dtype),
        grid=grid,
        in_specs=[
            pl.BlockSpec((tS, BD), lambda i: (i, 0)),           # x row blocks (lane-dense)
            pl.BlockSpec((tS, pe_width), lambda i: (i, 0)),     # pe rows windowed from table
        ],
        out_specs=pl.BlockSpec((tS, BD), lambda i: (i, 0)),
        compiler_params=pltpu.CompilerParams(
            dimension_semantics=("parallel",),                  # S blocks independent
            vmem_limit_bytes=vmem_limit,
        ),
    )(x2, pe_arr)
    return out2.reshape(S, B, D)


# --------------------------------------------------------------------------------- main ---

if __name__ == "__main__":
    MAX_LEN = 256  # stand-in for max_len=5000; only pe[:S] is ever used

    # Case 1: D multiple of 128 -> slab-add path (pe streamed only D lanes wide).
    S, B, D = 64, 2, 128
    pe1 = make_pe(MAX_LEN, D)
    x1 = jax.random.normal(jax.random.PRNGKey(0), (S, B, D), dtype=jnp.float32)
    out1 = jax.block_until_ready(positional_encoding(x1, pe1))
    ref1 = x1 + pe1[:S][:, None, :]
    assert out1.shape == (S, B, D)
    assert jnp.allclose(out1, ref1, atol=1e-6, rtol=1e-6)

    # Case 2: D not a 128 multiple but B*D >= 128 -> pre-broadcast path, partial last block.
    S2, B2, D2 = 40, 4, 64
    pe2 = make_pe(MAX_LEN, D2)
    x2 = jax.random.normal(jax.random.PRNGKey(1), (S2, B2, D2), dtype=jnp.float32)
    out2 = jax.block_until_ready(positional_encoding(x2, pe2))
    ref2 = x2 + pe2[:S2][:, None, :]
    assert jnp.allclose(out2, ref2, atol=1e-6, rtol=1e-6)

    # Case 3: tiny lanes (B*D < 128) -> guarded XLA fallback.
    S3, B3, D3 = 8, 2, 32
    pe3 = make_pe(MAX_LEN, D3)
    x3 = jax.random.normal(jax.random.PRNGKey(2), (S3, B3, D3), dtype=jnp.float32)
    out3 = jax.block_until_ready(positional_encoding(x3, pe3))
    ref3 = x3 + pe3[:S3][:, None, :]
    assert jnp.allclose(out3, ref3, atol=1e-6, rtol=1e-6)

    print("KERNEL_OK")
</pallas_src>

<mosaic_0001>
module attributes {stable_mosaic.version = 11 : i64} {
  func.func @pe_add_slab_kernel(%arg0: i32, %arg1: memref<16x256xf32, #tpu.memory_space<vmem>>, %arg2: memref<16x128xf32, #tpu.memory_space<vmem>>, %arg3: memref<16x256xf32, #tpu.memory_space<vmem>>) attributes {dimension_semantics = [#tpu.dimension_semantics<parallel>], iteration_bounds = array<i64: 4>, scalar_prefetch = 0 : i64, scratch_operands = 0 : i64, tpu.core_type = #tpu.core_type<tc>, window_params = [{transform_indices = @transform_0, window_bounds = array<i64: 16, 256>}, {transform_indices = @transform_1, window_bounds = array<i64: 16, 128>}, {transform_indices = @transform_2, window_bounds = array<i64: 16, 256>}]} {
    %c0 = arith.constant 0 : index
    %c0_0 = arith.constant 0 : index
    %0 = vector.load %arg2[%c0, %c0_0] : memref<16x128xf32, #tpu.memory_space<vmem>>, vector<16x128xf32>
    %c0_1 = arith.constant 0 : index
    %c0_2 = arith.constant 0 : index
    %1 = vector.load %arg1[%c0_1, %c0_2] : memref<16x256xf32, #tpu.memory_space<vmem>>, vector<16x128xf32>
    %2 = arith.addf %1, %0 : vector<16x128xf32>
    %c0_3 = arith.constant 0 : index
    %c0_4 = arith.constant 0 : index
    %3 = vector.load %arg3[%c0_3, %c0_4] : memref<16x256xf32, #tpu.memory_space<vmem>>, vector<16x128xf32>
    tpu.vector_store %arg3[%c0_3, %c0_4], %2 {strides = array<i32>} : memref<16x256xf32, #tpu.memory_space<vmem>>, vector<16x128xf32>,
    %c0_5 = arith.constant 0 : index
    %c128 = arith.constant 128 : index
    %4 = vector.load %arg1[%c0_5, %c128] : memref<16x256xf32, #tpu.memory_space<vmem>>, vector<16x128xf32>
    %5 = arith.addf %4, %0 : vector<16x128xf32>
    %c0_6 = arith.constant 0 : index
    %c128_7 = arith.constant 128 : index
    %6 = vector.load %arg3[%c0_6, %c128_7] : memref<16x256xf32, #tpu.memory_space<vmem>>, vector<16x128xf32>
    tpu.vector_store %arg3[%c0_6, %c128_7], %5 {strides = array<i32>} : memref<16x256xf32, #tpu.memory_space<vmem>>, vector<16x128xf32>,
    return
  }
  func.func @transform_0(%arg0: i32) -> (i32, i32) {
    %c0_i32 = arith.constant 0 : i32
    %c0_i32_0 = arith.constant 0 : i32
    return %arg0, %c0_i32 : i32, i32
  }
  func.func @transform_1(%arg0: i32) -> (i32, i32) {
    %c0_i32 = arith.constant 0 : i32
    %c0_i32_0 = arith.constant 0 : i32
    return %arg0, %c0_i32 : i32, i32
  }
  func.func @transform_2(%arg0: i32) -> (i32, i32) {
    %c0_i32 = arith.constant 0 : i32
    %c0_i32_0 = arith.constant 0 : i32
    return %arg0, %c0_i32 : i32, i32
  }
}

</mosaic_0001>

<bundles_post_ra>
// kernel: tpu_custom_call.1
= control target key start
LH: loop header
LB: loop body
LE: loop exit
PB: predicated region body
PF: predicated region fallthrough
CT: control target
= control target key end

     0   :  { %7 = vsyncpa [#allocation3], 0  ;;  %s779_s0 = inlined_call_operand.hbm [shape: f32[64,256], index: 0, kind: input, shape index: {}]   ;;  %s780_s1 = inlined_call_operand.hbm [shape: f32[256,128], index: 1, kind: input, shape index: {}]   ;;  %s781_s2 = inlined_call_operand.hbm [shape: f32[64,256], index: 2, kind: output, shape index: {}]  }
   0x1   :  { %9 = vsyncpa [#allocation3 + $0x1], 0 }
   0x2   :  { %10 = vsyncpa [#allocation6], 0 }
   0x3   :  { %12 = vsyncpa [#allocation6 + $0x1], 0 }
   0x4   :  { %13 = vsyncpa [#allocation4], 0 }
   0x5   :  { %15 = vsyncpa [#allocation4 + $0x1], 0  ;;  %s569_s9 = smov 0   ;;  %s571_s10 = smov 0  }
   0x6   :  { %s573_s11 = smov 0   ;;  %s575_s12 = smov 0  }
   0x7 LB: > { %s590_s13 = sadd.s32 4294967295, %s543_s12   ;;  %s331_s14 = sadd.s32 4294967294, %s543_s12   ;;  %s543_s12 = sphi %s575_s12, %s796_s12   ;;  %s539_s11 = sphi %s573_s11, %s795_s11   ;;  %s535_s10 = sphi %s571_s10, %s794_s10   ;;  %s531_s9 = sphi %s569_s9, %s793_s9  }
   0x8   : > { %s594_s15 = sadd.s32 1, %s543_s12   ;;  %s28_s16 = sadd.s32 1, %s539_s11 }
   0x9   : > { %s25_s17 = ssub.s32 %s543_s12, %s594_s15  ;;  %p35_p0 = scmp.ne.s32.totalorder %s539_s11, %s535_s10 }
   0xa   : > { %p26_p1 = scmp.eq.s32.totalorder %s25_s17, 0  ;;  %p36_p2 = scmp.eq.s32.totalorder %s543_s12, 0 }
   0xb   : > { %p41_p3 = scmp.ne.s32.totalorder %s535_s10, %s531_s9  ;;  %p42_p4 = scmp.eq.s32.totalorder %s590_s13, 0 }
   0xc   : > { %s606_s18 = scalar_select %p26_p1, %s539_s11, %s28_s16  }
   0xd   : > { %p608_p5 = por %p36_p2, %p35_p0  ;;  %p612_p6 = por %p42_p4, %p41_p3 }
   0xe   : > { %p91_p7 = scmp.eq.s32.totalorder %s590_s13, 3  ;;  %p97_p8 = scmp.eq.s32.totalorder %s331_s14, 3 }
   0xf   : > { %s785_s20 = scalar_select %p612_p6, 1, 0 }
  0x10   : > { %p373_p9 = scmp.lt.s32.totalorder %s543_s12, 4  ;;  %p618_p10 = por %p91_p7, %p35_p0 }
  0x11   : > { %p622_p11 = por %p97_p8, %p41_p3  ;;  %s627_s23 = sand.u32 1, %s539_s11  }
  0x12   : > { %s786_s21 = scalar_select %p618_p10, 1, 0 }
  0x13   : > { %s787_s22 = scalar_select %p622_p11, 1, 0 }
  0x14   : > { %s352_s24 = sshll.u32 %s543_s12, 9  ;;  %s334_s25 = sshll.u32 %s627_s23, 5 }
  0x15   : > { %s634_s28 = scalar_lea.hbm %s779_s0, %s352_s24  ;;  %s121_s29 = scalar_lea.vmem [#allocation2], %s334_s25 }
  0x16   : > { %s129_s30 = sshll.u32 %s121_s29, 4  ;;  %p638_p12 = pnand %p373_p9, %p608_p5  ;;  %s642_s30 = int_to_ptr.vmem [resolvable:$true] %s129_s30 }
  0x17   : > { %s118_s4 = scalar_lea.sflag [#allocation3], %s627_s23  ;;  %s413_s5 = scalar_lea.hbm %s634_s28, 512 }
  0x18   : > { %p414_p13 = scmp.ne.s32.totalorder %s634_s28, %s413_s5  ;;  %p415_p0 = pneg %p638_p12 }
  0x19   : > { %s418_s8 = scalar_lea.hbm %s779_s0, 2048  ;;  %p419_p3 = scmp.lt.u32.totalorder %s634_s28, %s779_s0 }
  0x1a   : > { %p416_p1 = pnand %p415_p0, %p414_p13  ;;  %p420_p4 = scmp.lt.u32.totalorder %s418_s8, %s413_s5 }
  0x1b   : > { %p422_p7 = scmp.lt.u32.totalorder %s413_s5, %s634_s28 }
  0x1c   : > { %p417_p2 = pneg %p416_p1  ;;  %p421_p5 = por %p420_p4, %p419_p3 }
  0x1e   : > { %p423_p8 = por %p422_p7, %p421_p5 }
  0x20   : > { %p424_p9 = pnand %p423_p8, %p417_p2 }
  0x22   : > { %427 = shalt.err (!%p424_p9)
}
  0x23   : > { %s428_s17 = scalar_lea.vmem %s642_s30, 512  ;;  %s545_s19 = smov [#allocation2]  }
  0x24   : > { %p429_p13 = scmp.ne.s32.totalorder %s642_s30, %s428_s17  ;;  %s433_s24 = sshll.u32 %s545_s19, 4  ;;  %s434_s24 = int_to_ptr.vmem [resolvable:$false] %s433_s24 }
  0x25   : > { %s435_s25 = scalar_lea.vmem %s434_s24, 1024  ;;  %p436_p10 = scmp.lt.s32.totalorder %s642_s30, %s434_s24 }
  0x26   : > { %p431_p1 = pnand %p429_p13, %p415_p0  ;;  %p437_p3 = scmp.lt.s32.totalorder %s435_s25, %s428_s17 }
  0x28   : > { %p432_p11 = pneg %p431_p1  ;;  %p438_p4 = por %p437_p3, %p436_p10 }
  0x2a   : > { %p439_p5 = pnand %p438_p4, %p432_p11 }
  0x2c   : > { %442 = shalt.err (!%p439_p5)
}
  0x2d   : > { %s546_s26 = smov 256   ;;  %s547_s27 = smov 16  }
  0x2e   : > { %365 = dma.hbm_to_vmem [thread:$0]  (!%p638_p12), %s634_s28, 512, %s642_s30, %s118_s4, %s546_s26, %s546_s26, %s547_s27  }
  0x2f   : > { %p341_p2 = scmp.ge.s32.totalorder %s543_s12, 1  ;;  %p158_p7 = scmp.lt.s32.totalorder %s543_s12, 5 }
  0x30   : > { %s338_s29 = sshll.u32 %s627_s23, 4  ;;  %s353_s6 = sshll.u32 %s543_s12, 8 }
  0x31   : > { %p675_p10 = pnand %p341_p2, %p158_p7  ;;  %s143_s7 = scalar_lea.vmem [#allocation5], %s338_s29 }
  0x32   : > { %s150_s8 = sshll.u32 %s143_s7, 4  ;;  %s683_s17 = scalar_lea.hbm %s780_s1, %s353_s6  ;;  %s685_s8 = int_to_ptr.vmem [resolvable:$true] %s150_s8 }
  0x33   : > { %s140_s28 = scalar_lea.sflag [#allocation6], %s627_s23  ;;  %s443_s30 = scalar_lea.hbm %s683_s17, 256 }
  0x34   : > { %p444_p11 = scmp.ne.s32.totalorder %s683_s17, %s443_s30  ;;  %s448_s24 = scalar_lea.hbm %s780_s1, 4096 }
  0x35   : > { %p449_p13 = scmp.lt.u32.totalorder %s683_s17, %s780_s1  ;;  %p450_p1 = scmp.lt.u32.totalorder %s448_s24, %s443_s30 }
  0x36   : > { %p446_p8 = pnand %p444_p11, %p415_p0  ;;  %p452_p4 = scmp.lt.u32.totalorder %s443_s30, %s683_s17 }
  0x37   : > { %p451_p3 = por %p450_p1, %p449_p13 }
  0x38   : > { %p447_p9 = pneg %p446_p8 }
  0x39   : > { %p453_p5 = por %p452_p4, %p451_p3 }
  0x3b   : > { %p454_p2 = pnand %p453_p5, %p447_p9 }
  0x3d   : > { %457 = shalt.err (!%p454_p2)
}
  0x3e   : > { %s458_s27 = scalar_lea.vmem %s685_s8, 256  ;;  %s548_s29 = smov [#allocation5]  }
  0x3f   : > { %p459_p7 = scmp.ne.s32.totalorder %s685_s8, %s458_s27  ;;  %s463_s6 = sshll.u32 %s548_s29, 4  ;;  %s464_s6 = int_to_ptr.vmem [resolvable:$false] %s463_s6 }
  0x40   : > { %s465_s7 = scalar_lea.vmem %s464_s6, 512  ;;  %p466_p6 = scmp.lt.s32.totalorder %s685_s8, %s464_s6 }
  0x41   : > { %p461_p11 = pnand %p459_p7, %p415_p0  ;;  %p467_p13 = scmp.lt.s32.totalorder %s465_s7, %s458_s27 }
  0x43   : > { %p462_p8 = pneg %p461_p11  ;;  %p468_p1 = por %p467_p13, %p466_p6 }
  0x45   : > { %p469_p3 = pnand %p468_p1, %p462_p8 }
  0x47   : > { %472 = shalt.err (!%p469_p3)
}
  0x48   : > { %s549_s14 = smov 128   ;;  %s550_s16 = smov 8  }
  0x49   : > { %368 = dma.hbm_to_vmem [thread:$0]  (!%p638_p12), %s683_s17, 256, %s685_s8, %s140_s28, %s549_s14, %s549_s14, %s550_s16  }
  0x4a   : > { %162 = sbr.rel (%p675_p10) target bundleno = 112 (0x70), region = 28  ;;  %s716_s30 = sand.u32 (!%p675_p10), 1, %s535_s10  }
  0x4b   : > { %s342_s4 = sshll.u32 (!%p675_p10), %s716_s30, 5  ;;  %s165_s19 = scalar_lea.sflag (!%p675_p10), [#allocation3], %s716_s30 }
  0x4c   : > { %s168_s24 = scalar_lea.vmem (!%p675_p10), [#allocation2], %s342_s4  ;;  %p790_p6 = scmp.ne.s32.totalorder (!%p675_p10), %s785_s20, 0 }
  0x51   : > { %518 = dma.done.wait (%p790_p6), %s165_s19, 512  }
  0x52   : > { %520 = vsyncadd (%p790_p6), %s165_s19, 4294966784  ;;  %s343_s23 = sshll.u32 %s716_s30, 4  ;;  %s174_s3 = scalar_lea.sflag [#allocation6], %s716_s30 }
  0x53   : > { %s177_s5 = scalar_lea.vmem [#allocation5], %s343_s23 }
  0x54   : > { %522 = dma.done.wait (%p790_p6), %s174_s3, 256  }
  0x55   : > { %524 = vsyncadd (%p790_p6), %s174_s3, 4294967040  ;;  %s202_s8 = scalar_lea.vmem [#allocation7], %s342_s4  ;;  %s355_s28 = sshll.u32 %s590_s13, 9  ;;  %v206_v0 = vld [vmem:[%s177_s5] sm:$0xff]  ;;  %v207_v2 = vld [vmem:[%s177_s5 + $0x8] sm:$0xff] }
  0x56   : > { %s235_s17 = sshll.u32 %s202_s8, 4  ;;  %v208_v1 = vld [vmem:[%s168_s24] sm:$0xff]  ;;  %v209_v4 = vld [vmem:[%s168_s24 + $0x10] sm:$0xff]  ;;  %v214_v5 = vld [vmem:[%s168_s24 + $0x8] sm:$0xff]  ;;  %s736_s26 = scalar_lea.hbm %s781_s2, %s355_s28  ;;  %s731_s17 = int_to_ptr.vmem [resolvable:$true] %s235_s17 }
  0x57   : > { %v210_v3 = vadd.f32 %v208_v1, %v206_v0  ;;  %v215_v6 = vld [vmem:[%s168_s24 + $0x18] sm:$0xff]  ;;  %v211_v7 = vadd.f32 %v209_v4, %v207_v2  ;;  %v216_v8 = vadd.f32 %v214_v5, %v206_v0  ;;  %s221_s13 = scalar_lea.sflag [#allocation4], %s716_s30  ;;  %s473_s27 = scalar_lea.vmem %s731_s17, 512 }
  0x58   : > { %v217_v9 = vadd.f32 %v215_v6, %v207_v2  ;;  %p474_p12 = scmp.ne.s32.totalorder %s731_s17, %s473_s27  ;;  %p791_p0 = scmp.ne.s32.totalorder %s786_s21, 0 }
  0x59   : > { %212 = vst [vmem:[%s202_s8] sm:$0xff] %v210_v3  ;;  %213 = vst [vmem:[%s202_s8 + $0x10] sm:$0xff] %v211_v7  ;;  %s551_s29 = smov [#allocation7]  }
  0x5a   : > { %218 = vst [vmem:[%s202_s8 + $0x8] sm:$0xff] %v216_v8  ;;  %219 = vst [vmem:[%s202_s8 + $0x18] sm:$0xff] %v217_v9  ;;  %p475_p10 = pnand %p474_p12, %p791_p0  ;;  %s477_s6 = sshll.u32 %s551_s29, 4  ;;  %s478_s6 = int_to_ptr.vmem [resolvable:$false] %s477_s6 }
  0x5b   : > { %s479_s7 = scalar_lea.vmem %s478_s6, 1024  ;;  %p480_p4 = scmp.lt.s32.totalorder %s731_s17, %s478_s6 }
  0x5c   : > { %p476_p9 = pneg %p475_p10  ;;  %p481_p5 = scmp.lt.s32.totalorder %s479_s7, %s473_s27 }
  0x5e   : > { %p482_p2 = por %p481_p5, %p480_p4 }
  0x60   : > { %p483_p7 = pnand %p482_p2, %p476_p9 }
  0x62   : > { %486 = shalt.err (!%p483_p7)
}
  0x63   : > { %s487_s14 = scalar_lea.hbm %s736_s26, 512  ;;  %s491_s19 = scalar_lea.hbm %s781_s2, 2048 }
  0x64   : > { %p488_p11 = scmp.ne.s32.totalorder %s736_s26, %s487_s14  ;;  %p492_p1 = scmp.lt.u32.totalorder %s736_s26, %s781_s2 }
  0x65   : > { %p493_p3 = scmp.lt.u32.totalorder %s491_s19, %s487_s14  ;;  %p495_p12 = scmp.lt.u32.totalorder %s487_s14, %s736_s26 }
  0x66   : > { %p489_p8 = pnand %p488_p11, %p791_p0 }
  0x67   : > { %p494_p6 = por %p493_p3, %p492_p1 }
  0x68   : > { %p490_p13 = pneg %p489_p8 }
  0x69   : > { %p496_p10 = por %p495_p12, %p494_p6 }
  0x6b   : > { %p497_p9 = pnand %p496_p10, %p490_p13 }
  0x6d   : > { %500 = shalt.err (!%p497_p9)
}
  0x6e   : > { %s552_s3 = smov 256   ;;  %s553_s5 = smov 16  }
  0x6f   : > { %360 = dma.vmem_to_hbm [thread:$0]  (%p791_p0), %s731_s17, 512, %s736_s26, %s221_s13, %s552_s3, %s552_s3, %s553_s5  }
  0x70 PF: > { %p374_p4 = scmp.ge.s32.totalorder %s543_s12, 2  ;;  %s250_s8 = sand.u32 1, %s531_s9  }
  0x71   : > { %p792_p5 = scmp.ne.s32.totalorder %s787_s22, 0  ;;  %s251_s28 = scalar_lea.sflag [#allocation4], %s250_s8 }
  0x73   : > { %p370_p2 = pnand %p374_p4, %p792_p5 }
  0x75   : > { %526 = dma.done.wait (!%p370_p2), %s251_s28, 512  }
  0x76   : > { %528 = vsyncadd (!%p370_p2), %s251_s28, 4294966784  ;;  %p18_p7 = scmp.ge.s32.totalorder %s594_s15, 6   ;;  %s793_s9 = smov %s535_s10 }
  0x77   : > { %s794_s10 = smov %s539_s11  ;;  %s795_s11 = smov %s606_s18 }
  0x78   : > { %s796_s12 = smov %s594_s15  ;;  %20 = sbr.rel (!%p18_p7) target bundleno = 7 (0x7), region = 86 }
  0x7f   :  { %256 = vsyncpa [#allocation3], 1 }
  0x80   :  { %258 = vsyncpa [#allocation3 + $0x1], 1 }
  0x81   :  { %259 = vsyncpa [#allocation6], 1 }
  0x82   :  { %261 = vsyncpa [#allocation6 + $0x1], 1 }
  0x83   :  { %262 = vsyncpa [#allocation4], 1 }
  0x84   :  { %264 = vsyncpa [#allocation4 + $0x1], 1 }

</bundles_post_ra>
